<compile_context>
chip_gen: v6e
topology: v6e:2x2x1
jax: 0.10.0
libtpu: 0.0.40
codegen_flags: <defaults>
</compile_context>

<pallas_src>
import jax
import jax.numpy as jnp
from jax import lax
from jax.experimental import pallas as pl
from jax.experimental.pallas import tpu as pltpu

# Static problem sizes from the module: Linear(2, 3), x = randn(2, 2), 6 copies.
B = 2
DIN = 2
DOUT = 3
NCOPIES = 6
ROW = DOUT * B                    # 6  (one copy of flatten(y^T))
OUT_LEN = NCOPIES * ROW           # 36
N_PARAMS = DOUT * DIN + DOUT      # 9  (packed weight then bias)


def _fused_kernel(x_ref, p_ref, o_ref):
    """Fused Linear + transpose + 6x replicate, emitted in final flat layout.

    x_ref: (B*DIN,)     f32, SMEM   x_ref[j*DIN + d]      = x[j, d]
    p_ref: (N_PARAMS,)  f32, SMEM   p_ref[f*DIN + d]      = W[f, d]  (PyTorch layout)
                                    p_ref[DOUT*DIN + f]   = bias[f]
    o_ref: (1, OUT_LEN) f32, VMEM   o_ref[0, k*ROW + f*B + j] = y[j, f]
    """
    # Lane index over one copy of the row; used to scatter scalars with selects
    # (pure VPU, no XLU).
    pos = lax.broadcasted_iota(jnp.int32, (1, ROW), 1)
    zero = jnp.zeros((1, ROW), dtype=jnp.float32)

    # 12 scalar MACs on the scalar unit -- a 2x2x3 matmul does not warrant the
    # MXU (systolic push + result drain for 24 FLOPs).  Each (f, j) result is
    # masked into its own independent term; no read-modify-write chain.
    terms = []
    for f in range(DOUT):
        for j in range(B):
            s = p_ref[DOUT * DIN + f]                       # bias[f]
            for d in range(DIN):
                s = s + x_ref[j * DIN + d] * p_ref[f * DIN + d]
            terms.append(jnp.where(pos == (f * B + j), s, zero))

    # Balanced add tree (depth 3 for 6 terms) instead of a 6-deep select chain.
    while len(terms) > 1:
        nxt = [terms[i] + terms[i + 1] for i in range(0, len(terms) - 1, 2)]
        if len(terms) % 2:
            nxt.append(terms[-1])
        terms = nxt
    row = terms[0]                                          # (1, ROW)

    # Replicate the 6 stacked copies along the LANE axis (concat on lanes),
    # producing the final flat order directly; single-sublane vector store.
    o_ref[...] = jnp.concatenate([row] * NCOPIES, axis=1)   # (1, OUT_LEN)


# Advisory cost hint: 2*B*DIN*DOUT MACs + B*DOUT bias adds; ~196 bytes touched.
_COST = pl.CostEstimate(
    flops=2 * B * DIN * DOUT + B * DOUT,
    transcendentals=0,
    bytes_accessed=4 * (B * DIN + N_PARAMS + OUT_LEN),
)


def _fused_call(x_flat, params):
    return pl.pallas_call(
        _fused_kernel,
        out_shape=jax.ShapeDtypeStruct((1, OUT_LEN), jnp.float32),
        in_specs=[
            pl.BlockSpec(memory_space=pltpu.MemorySpace.SMEM),  # x   (B*DIN,)
            pl.BlockSpec(memory_space=pltpu.MemorySpace.SMEM),  # w|b (N_PARAMS,)
        ],
        out_specs=pl.BlockSpec(memory_space=pltpu.MemorySpace.VMEM),
        cost_estimate=_COST,
    )(x_flat, params)


def pack_params(w, b):
    """Pack PyTorch-layout weight (DOUT, DIN) and bias (DOUT,) into one flat
    f32 vector.  Called ONCE, outside the per-call path."""
    return jnp.concatenate([w.reshape(-1), b.reshape(-1)]).astype(jnp.float32)


@jax.jit
def model_forward(x, params):
    """Full Model.forward; x is (B, DIN), params = pack_params(w, b)."""
    out_row = _fused_call(x.reshape(-1), params)   # (1, OUT_LEN), final order
    # Dropping a leading unit dim is layout-identical under (8,128) tiling.
    return out_row.reshape(-1)                     # (OUT_LEN,)


if __name__ == "__main__":
    key = jax.random.PRNGKey(0)
    kx, kw, kb = jax.random.split(key, 3)

    # Deterministic synthetic inputs / parameters (shapes per nn.Linear(2, 3)).
    x = jax.random.normal(kx, (B, DIN), dtype=jnp.float32)
    w = jax.random.normal(kw, (DOUT, DIN), dtype=jnp.float32) * 0.5   # (out, in)
    b = jax.random.normal(kb, (DOUT,), dtype=jnp.float32) * 0.1

    params = pack_params(w, b)            # one-time packing, off the hot path
    out = model_forward(x, params)
    jax.block_until_ready(out)

    # Pure-JAX reference of the exact PyTorch op sequence.
    y_ref = x @ w.T + b                                   # (B, 3)
    t = jnp.stack((y_ref[:, :, None],) * NCOPIES, axis=2)  # (B, 3, 6, 1)
    t = jnp.swapaxes(t, 0, 2)                             # (6, 3, B, 1)
    ref = t.reshape(-1)                                   # (36,)

    assert out.shape == (OUT_LEN,)
    assert jnp.allclose(out, ref, atol=1e-5, rtol=1e-5)

    print("KERNEL_OK")
</pallas_src>

<mosaic_0001>
module attributes {stable_mosaic.version = 11 : i64} {
  func.func @_fused_kernel(%arg0: memref<4xf32, #tpu.memory_space<smem>>, %arg1: memref<9xf32, #tpu.memory_space<smem>>, %arg2: memref<1x36xf32, #tpu.memory_space<vmem>>) attributes {dimension_semantics = [], scalar_prefetch = 0 : i64, scratch_operands = 0 : i64, tpu.core_type = #tpu.core_type<tc>} {
    %0 = tpu.iota {dimensions = array<i32: 1>} : vector<1x6xi32>
    %cst = arith.constant 0.000000e+00 : f32
    %1 = vector.broadcast %cst : f32 to vector<1x6xf32>
    %c6 = arith.constant 6 : index
    %2 = memref.load %arg1[%c6] : memref<9xf32, #tpu.memory_space<smem>>
    %c0 = arith.constant 0 : index
    %3 = memref.load %arg0[%c0] : memref<4xf32, #tpu.memory_space<smem>>
    %c0_0 = arith.constant 0 : index
    %4 = memref.load %arg1[%c0_0] : memref<9xf32, #tpu.memory_space<smem>>
    %5 = arith.mulf %3, %4 : f32
    %6 = arith.addf %2, %5 : f32
    %c1 = arith.constant 1 : index
    %7 = memref.load %arg0[%c1] : memref<4xf32, #tpu.memory_space<smem>>
    %c1_1 = arith.constant 1 : index
    %8 = memref.load %arg1[%c1_1] : memref<9xf32, #tpu.memory_space<smem>>
    %9 = arith.mulf %7, %8 : f32
    %10 = arith.addf %6, %9 : f32
    %c0_i32 = arith.constant 0 : i32
    %11 = vector.broadcast %c0_i32 : i32 to vector<1x6xi32>
    %12 = arith.cmpi eq, %0, %11 : vector<1x6xi32>
    %13 = vector.broadcast %10 : f32 to vector<1x6xf32>
    %14 = arith.select %12, %13, %1 : vector<1x6xi1>, vector<1x6xf32>
    %c6_2 = arith.constant 6 : index
    %15 = memref.load %arg1[%c6_2] : memref<9xf32, #tpu.memory_space<smem>>
    %c2 = arith.constant 2 : index
    %16 = memref.load %arg0[%c2] : memref<4xf32, #tpu.memory_space<smem>>
    %c0_3 = arith.constant 0 : index
    %17 = memref.load %arg1[%c0_3] : memref<9xf32, #tpu.memory_space<smem>>
    %18 = arith.mulf %16, %17 : f32
    %19 = arith.addf %15, %18 : f32
    %c3 = arith.constant 3 : index
    %20 = memref.load %arg0[%c3] : memref<4xf32, #tpu.memory_space<smem>>
    %c1_4 = arith.constant 1 : index
    %21 = memref.load %arg1[%c1_4] : memref<9xf32, #tpu.memory_space<smem>>
    %22 = arith.mulf %20, %21 : f32
    %23 = arith.addf %19, %22 : f32
    %c1_i32 = arith.constant 1 : i32
    %24 = vector.broadcast %c1_i32 : i32 to vector<1x6xi32>
    %25 = arith.cmpi eq, %0, %24 : vector<1x6xi32>
    %26 = vector.broadcast %23 : f32 to vector<1x6xf32>
    %27 = arith.select %25, %26, %1 : vector<1x6xi1>, vector<1x6xf32>
    %c7 = arith.constant 7 : index
    %28 = memref.load %arg1[%c7] : memref<9xf32, #tpu.memory_space<smem>>
    %c0_5 = arith.constant 0 : index
    %29 = memref.load %arg0[%c0_5] : memref<4xf32, #tpu.memory_space<smem>>
    %c2_6 = arith.constant 2 : index
    %30 = memref.load %arg1[%c2_6] : memref<9xf32, #tpu.memory_space<smem>>
    %31 = arith.mulf %29, %30 : f32
    %32 = arith.addf %28, %31 : f32
    %c1_7 = arith.constant 1 : index
    %33 = memref.load %arg0[%c1_7] : memref<4xf32, #tpu.memory_space<smem>>
    %c3_8 = arith.constant 3 : index
    %34 = memref.load %arg1[%c3_8] : memref<9xf32, #tpu.memory_space<smem>>
    %35 = arith.mulf %33, %34 : f32
    %36 = arith.addf %32, %35 : f32
    %c2_i32 = arith.constant 2 : i32
    %37 = vector.broadcast %c2_i32 : i32 to vector<1x6xi32>
    %38 = arith.cmpi eq, %0, %37 : vector<1x6xi32>
    %39 = vector.broadcast %36 : f32 to vector<1x6xf32>
    %40 = arith.select %38, %39, %1 : vector<1x6xi1>, vector<1x6xf32>
    %c7_9 = arith.constant 7 : index
    %41 = memref.load %arg1[%c7_9] : memref<9xf32, #tpu.memory_space<smem>>
    %c2_10 = arith.constant 2 : index
    %42 = memref.load %arg0[%c2_10] : memref<4xf32, #tpu.memory_space<smem>>
    %c2_11 = arith.constant 2 : index
    %43 = memref.load %arg1[%c2_11] : memref<9xf32, #tpu.memory_space<smem>>
    %44 = arith.mulf %42, %43 : f32
    %45 = arith.addf %41, %44 : f32
    %c3_12 = arith.constant 3 : index
    %46 = memref.load %arg0[%c3_12] : memref<4xf32, #tpu.memory_space<smem>>
    %c3_13 = arith.constant 3 : index
    %47 = memref.load %arg1[%c3_13] : memref<9xf32, #tpu.memory_space<smem>>
    %48 = arith.mulf %46, %47 : f32
    %49 = arith.addf %45, %48 : f32
    %c3_i32 = arith.constant 3 : i32
    %50 = vector.broadcast %c3_i32 : i32 to vector<1x6xi32>
    %51 = arith.cmpi eq, %0, %50 : vector<1x6xi32>
    %52 = vector.broadcast %49 : f32 to vector<1x6xf32>
    %53 = arith.select %51, %52, %1 : vector<1x6xi1>, vector<1x6xf32>
    %c8 = arith.constant 8 : index
    %54 = memref.load %arg1[%c8] : memref<9xf32, #tpu.memory_space<smem>>
    %c0_14 = arith.constant 0 : index
    %55 = memref.load %arg0[%c0_14] : memref<4xf32, #tpu.memory_space<smem>>
    %c4 = arith.constant 4 : index
    %56 = memref.load %arg1[%c4] : memref<9xf32, #tpu.memory_space<smem>>
    %57 = arith.mulf %55, %56 : f32
    %58 = arith.addf %54, %57 : f32
    %c1_15 = arith.constant 1 : index
    %59 = memref.load %arg0[%c1_15] : memref<4xf32, #tpu.memory_space<smem>>
    %c5 = arith.constant 5 : index
    %60 = memref.load %arg1[%c5] : memref<9xf32, #tpu.memory_space<smem>>
    %61 = arith.mulf %59, %60 : f32
    %62 = arith.addf %58, %61 : f32
    %c4_i32 = arith.constant 4 : i32
    %63 = vector.broadcast %c4_i32 : i32 to vector<1x6xi32>
    %64 = arith.cmpi eq, %0, %63 : vector<1x6xi32>
    %65 = vector.broadcast %62 : f32 to vector<1x6xf32>
    %66 = arith.select %64, %65, %1 : vector<1x6xi1>, vector<1x6xf32>
    %c8_16 = arith.constant 8 : index
    %67 = memref.load %arg1[%c8_16] : memref<9xf32, #tpu.memory_space<smem>>
    %c2_17 = arith.constant 2 : index
    %68 = memref.load %arg0[%c2_17] : memref<4xf32, #tpu.memory_space<smem>>
    %c4_18 = arith.constant 4 : index
    %69 = memref.load %arg1[%c4_18] : memref<9xf32, #tpu.memory_space<smem>>
    %70 = arith.mulf %68, %69 : f32
    %71 = arith.addf %67, %70 : f32
    %c3_19 = arith.constant 3 : index
    %72 = memref.load %arg0[%c3_19] : memref<4xf32, #tpu.memory_space<smem>>
    %c5_20 = arith.constant 5 : index
    %73 = memref.load %arg1[%c5_20] : memref<9xf32, #tpu.memory_space<smem>>
    %74 = arith.mulf %72, %73 : f32
    %75 = arith.addf %71, %74 : f32
    %c5_i32 = arith.constant 5 : i32
    %76 = vector.broadcast %c5_i32 : i32 to vector<1x6xi32>
    %77 = arith.cmpi eq, %0, %76 : vector<1x6xi32>
    %78 = vector.broadcast %75 : f32 to vector<1x6xf32>
    %79 = arith.select %77, %78, %1 : vector<1x6xi1>, vector<1x6xf32>
    %80 = arith.addf %14, %27 : vector<1x6xf32>
    %81 = arith.addf %40, %53 : vector<1x6xf32>
    %82 = arith.addf %66, %79 : vector<1x6xf32>
    %83 = arith.addf %80, %81 : vector<1x6xf32>
    %84 = arith.addf %83, %82 : vector<1x6xf32>
    %85 = tpu.concatenate %84, %84, %84, %84, %84, %84 in 1 : vector<1x6xf32>, vector<1x6xf32>, vector<1x6xf32>, vector<1x6xf32>, vector<1x6xf32>, vector<1x6xf32> -> vector<1x36xf32>
    %c0_21 = arith.constant 0 : index
    %c0_22 = arith.constant 0 : index
    %86 = vector.load %arg2[%c0_21, %c0_22] : memref<1x36xf32, #tpu.memory_space<vmem>>, vector<1x36xf32>
    tpu.vector_store %arg2[%c0_21, %c0_22], %85 {strides = array<i32>} : memref<1x36xf32, #tpu.memory_space<vmem>>, vector<1x36xf32>,
    return
  }
}

</mosaic_0001>

<bundles_post_ra>
// kernel: model_forward.1
= control target key start
LH: loop header
LB: loop body
LE: loop exit
PB: predicated region body
PF: predicated region fallthrough
CT: control target
= control target key end

     0   :  { %7 = vsyncpa [#allocation4], 0  ;;  %s272_s0 = inlined_call_operand.vmem [shape: f32[4], index: 0, kind: input, shape index: {}]   ;;  %s273_s1 = inlined_call_operand.vmem [shape: f32[9], index: 1, kind: input, shape index: {}]   ;;  %s274_s2 = inlined_call_operand.hbm [shape: f32[1,36], index: 2, kind: output, shape index: {}]  }
   0x1   :  { %8 = vsyncpa [#allocation6], 0 }
   0x2   :  { %9 = vsyncpa [#allocation3], 0  ;;  %s16_s11 = sshll.u32 %s272_s0, 4  ;;  %s26_s14 = sshll.u32 %s273_s1, 4  ;;  %s17_s11 = int_to_ptr.vmem [resolvable:$true] %s16_s11  ;;  %s27_s14 = int_to_ptr.vmem [resolvable:$true] %s26_s14 }
   0x3   :  { %s162_s15 = scalar_lea.vmem %s17_s11, 16  ;;  %p167_p1 = scmp.lt.s32.totalorder %s17_s11, %s17_s11 }
   0x4   :  { %p163_p0 = scmp.ne.s32.totalorder %s17_s11, %s162_s15  ;;  %p168_p2 = scmp.lt.s32.totalorder %s162_s15, %s162_s15 }
   0x6   :  { %p169_p3 = por %p168_p2, %p167_p1 }
   0x8   :  { %p170_p4 = pnand %p169_p3, %p163_p0 }
   0xa   :  { %173 = shalt.err (!%p170_p4)
}
   0xb   :  { %s212_s16 = smov [#allocation2]   ;;  %s174_s17 = scalar_lea.vmem %s27_s14, 16 }
   0xc   :  { %19 = dma.vmem_to_smem %s17_s11, 16, %s212_s16, [#allocation4]  }
   0xd   :  { %p175_p5 = scmp.ne.s32.totalorder %s27_s14, %s174_s17  ;;  %p179_p6 = scmp.lt.s32.totalorder %s27_s14, %s27_s14 }
   0xe   :  { %p180_p7 = scmp.lt.s32.totalorder %s174_s17, %s174_s17 }
  0x10   :  { %p181_p8 = por %p180_p7, %p179_p6 }
  0x12   :  { %p182_p9 = pnand %p181_p8, %p175_p5 }
  0x14   :  { %185 = shalt.err (!%p182_p9)
}
  0x15   :  { %s213_s0 = smov [#allocation5]  }
  0x16   :  { %29 = dma.vmem_to_smem %s27_s14, 16, %s213_s0, [#allocation6]  }
  0x17   :  { %206 = dma.done.wait [#allocation4], 16  }
  0x18   :  { %207 = vsyncadd [#allocation4], 4294967280 }
  0x19   :  { %208 = dma.done.wait [#allocation6], 16  }
  0x1a   :  { %209 = vsyncadd [#allocation6], 4294967280 }
  0x1b   :  { %36 = sfence }
  0x1c   :  { %s143_s1 = sld [smem:[#allocation5 + $0x6]]  ;;  %v37_v0 = vlaneseq  ;;  %vm115_vm6 = vcmask 48128   ;;  %vm117_vm7 = vcmask 97280   ;;  %vm119_vm8 = vcmask 146432  }
  0x1d   :  { %s241_s18 = sld [smem:[#allocation2]]  ;;  %vm121_vm9 = vcmask 195584   ;;  %vm123_vm10 = vcmask 244736   ;;  %vm125_vm11 = vcmask 286720  }
  0x1e   :  { %s41_s19 = sld [smem:[#allocation5]]  ;;  %v38_v1 = vand.u32 127, %v37_v0 }
  0x1f   :  { %s243_s20 = sld [smem:[#allocation2 + $0x1]] }
  0x20   :  { %s145_s21 = sld [smem:[#allocation5 + $0x1]]  ;;  %vm48_vm0 = vcmp.eq.s32.totalorder %v38_v1, 0  ;;  %vm57_vm1 = vcmp.eq.s32.totalorder %v38_v1, 1  ;;  %vm67_vm2 = vcmp.eq.s32.totalorder %v38_v1, 2  ;;  %vm74_vm3 = vcmp.eq.s32.totalorder %v38_v1, 3 }
  0x21   :  { %s245_s22 = sld [smem:[#allocation2 + $0x2]]  ;;  %vm84_vm4 = vcmp.eq.s32.totalorder %v38_v1, 4  ;;  %vm91_vm5 = vcmp.eq.s32.totalorder %v38_v1, 5 }
  0x22   :  { %s247_s23 = sld [smem:[#allocation2 + $0x3]] }
  0x23   :  { %s148_s24 = sld [smem:[#allocation5 + $0x7]] }
  0x24   :  { %s42_s25 = smul.f32 %s41_s19, %s241_s18  ;;  %s149_s26 = sld [smem:[#allocation5 + $0x2]] }
  0x25   :  { %s250_s27 = sld [smem:[#allocation5 + $0x3]] }
  0x26   :  { %s43_s28 = sadd.f32 %s143_s1, %s42_s25  ;;  %s46_s29 = smul.f32 %s145_s21, %s243_s20 }
  0x27   :  { %s52_s30 = smul.f32 %s245_s22, %s41_s19  ;;  %s254_s3 = sld [smem:[#allocation5 + $0x8]] }
  0x28   :  { %s47_s4 = sadd.f32 %s46_s29, %s43_s28  ;;  %s55_s5 = smul.f32 %s247_s23, %s145_s21 }
  0x29   :  { %s53_s6 = sadd.f32 %s143_s1, %s52_s30  ;;  %s219_s29 = smov [#allocation7]  }
  0x2a   :  { %s62_s7 = smul.f32 %s149_s26, %s241_s18  ;;  %s152_s8 = sld [smem:[#allocation5 + $0x4]]  ;;  %v49_v2 = vstv %s47_s4 }
  0x2b   :  { %s56_s9 = sadd.f32 %s55_s5, %s53_s6  ;;  %s65_s10 = smul.f32 %s250_s27, %s243_s20  ;;  %v50_v5 = vsel %vm48_vm0, %v49_v2, 0.0 }
  0x2c   :  { %s63_s11 = sadd.f32 %s148_s24, %s62_s7  ;;  %s70_s12 = smul.f32 %s149_s26, %s245_s22 }
  0x2d   :  { %s72_s13 = smul.f32 %s250_s27, %s247_s23  ;;  %s153_s14 = sld [smem:[#allocation5 + $0x5]]  ;;  %v58_v3 = vstv %s56_s9 }
  0x2e   :  { %s66_s15 = sadd.f32 %s65_s10, %s63_s11  ;;  %v59_v6 = vsel %vm57_vm1, %v58_v3, 0.0  ;;  %s133_s30 = sshll.u32 %s219_s29, 4  ;;  %s134_s30 = int_to_ptr.vmem [resolvable:$true] %s133_s30 }
  0x2f   :  { %s71_s16 = sadd.f32 %s148_s24, %s70_s12  ;;  %v94_v10 = vadd.f32 %v59_v6, %v50_v5  ;;  %s218_s24 = smov 30  }
  0x30   :  { %v68_v4 = vstv %s66_s15  ;;  %s79_s17 = smul.f32 %s152_s8, %s241_s18  ;;  %s214_s18 = smov 6  }
  0x31   :  { %s73_s0 = sadd.f32 %s72_s13, %s71_s16  ;;  %s87_s1 = smul.f32 %s152_s8, %s245_s22  ;;  %v69_v7 = vsel %vm67_vm2, %v68_v4, 0.0 }
  0x32   :  { %s80_s19 = sadd.f32 %s254_s3, %s79_s17  ;;  %s215_s22 = smov 18  }
  0x33   :  { %v75_v8 = vstv %s73_s0  ;;  %s82_s21 = smul.f32 %s153_s14, %s243_s20  ;;  %s88_s25 = sadd.f32 %s254_s3, %s87_s1 }
  0x34   :  { %v76_v9 = vsel %vm74_vm3, %v75_v8, 0.0  ;;  %s89_s26 = smul.f32 %s153_s14, %s247_s23  ;;  %s216_s20 = smov 12  }
  0x35   :  { %s83_s27 = sadd.f32 %s82_s21, %s80_s19  ;;  %v95_v11 = vadd.f32 %v76_v9, %v69_v7  ;;  %s217_s23 = smov 24  }
  0x36   :  { %s90_s28 = sadd.f32 %s89_s26, %s88_s25  ;;  %s186_s3 = scalar_lea.vmem %s134_s30, 16 }
  0x37   :  { %v85_v12 = vstv %s83_s27  ;;  %v97_v15 = vadd.f32 %v95_v11, %v94_v10  ;;  %p187_p10 = scmp.ne.s32.totalorder %s134_s30, %s186_s3  ;;  %s190_s4 = scalar_lea.vmem %s134_s30, 32 }
  0x38   :  { %v86_v13 = vsel %vm84_vm4, %v85_v12, 0.0  ;;  %v92_v14 = vstv %s90_s28  ;;  %p191_p11 = scmp.lt.s32.totalorder %s134_s30, %s134_s30  ;;  %p192_p12 = scmp.lt.s32.totalorder %s190_s4, %s186_s3 }
  0x39   :  { %v93_v16 = vsel %vm91_vm5, %v92_v14, 0.0 }
  0x3a   :  { %v96_v17 = vadd.f32 %v93_v16, %v86_v13  ;;  %p193_p13 = por %p192_p12, %p191_p11 }
  0x3c   :  { %v98_v18 = vadd.f32 %v97_v15, %v96_v17  ;;  %p194_p0 = pnand %p193_p13, %p187_p10 }
  0x3e   :  { %100 = vrot.lane.b32.xlu0 %v98_v18, %s214_s18  ;;  %106 = vrot.lane.b32.xlu1 %v98_v18, %s215_s22 }
  0x42   :  { %103 = vrot.lane.b32.xlu0 %v98_v18, %s216_s20  ;;  %109 = vrot.lane.b32.xlu1 %v98_v18, %s217_s23 }
  0x46   :  { %112 = vrot.lane.b32.xlu0 %v98_v18, %s218_s24 }
  0xb0   :  { %v101_v19 = vpop.permute.xlu0 %100  ;;  %v107_v20 = vpop.permute.xlu1 %106 }
  0xb1   :  { %v116_v21 = vsel %vm115_vm6, %v98_v18, %v101_v19 }
  0xb4   :  { %v104_v22 = vpop.permute.xlu0 %103  ;;  %v110_v23 = vpop.permute.xlu1 %109 }
  0xb5   :  { %v118_v24 = vsel %vm117_vm7, %v116_v21, %v104_v22 }
  0xb6   :  { %v120_v25 = vsel %vm119_vm8, %v118_v24, %v107_v20 }
  0xb7   :  { %v122_v26 = vsel %vm121_vm9, %v120_v25, %v110_v23 }
  0xb8   :  { %v113_v27 = vpop.permute.xlu0 %112 }
  0xb9   :  { %v124_v28 = vsel %vm123_vm10, %v122_v26, %v113_v27 }
  0xba   :  { %126 = vst.msk [vmem:[#allocation7] sm:$0x1] %vm125_vm11, %v124_v28 }
  0xbb   :  { %197 = shalt.err (!%p194_p0)
}
  0xbc   :  { %136 = dma.vmem_to_hbm [thread:$0]  %s134_s30, 16, %s274_s2, [#allocation3]  }
  0xbd   :  { %210 = dma.done.wait [#allocation3], 16  }
  0xbe   :  { %211 = vsyncadd [#allocation3], 4294967280 }
  0xbf   :  { %140 = vsyncpa [#allocation3], 1 }
  0xc0   :  { %141 = vsyncpa [#allocation4], 1 }
  0xc1   :  { %142 = vsyncpa [#allocation6], 1 }

</bundles_post_ra>
